<compile_context>
chip_gen: v5e
topology: v5e:2x2
jax: 0.10.0
libtpu: 0.0.40
codegen_flags: <defaults>
</compile_context>

<pallas_src>
import functools

import jax
import jax.numpy as jnp
import numpy as np
from jax.experimental import pallas as pl
from jax.experimental.pallas import tpu as pltpu


def _fourier_kernel(x_ref, w_ref, phase_ref, o_ref):
    # (tm, K) @ (K, 2F) on the MXU (idle unit here; the VPU is the binding
    # unit because sin lowers to range-reduction + polynomial).  Mosaic runs
    # f32 matmuls at native f32 contraction precision.
    z = jnp.dot(x_ref[...], w_ref[...], preferred_element_type=jnp.float32)
    z = z + phase_ref[...]                         # (1, 2F) sublane-broadcast bias
    o_ref[...] = jnp.sin(z).astype(o_ref.dtype)    # single lane-dense store


@functools.partial(jax.jit, static_argnames=("tm", "out_dtype"))
def fourier_feature_embedding(x, weights, *, tm=None, out_dtype=None):
    """x: (N, in_features); weights: (in_features, out_features).
    Returns (N, 2*out_features) in `out_dtype` (default: x.dtype).
    On v5e, prefer out_dtype=jnp.bfloat16 (halves HBM writeback)."""
    n, in_features = x.shape
    in_w, out_features = weights.shape
    assert in_w == in_features
    out_dtype = jnp.dtype(out_dtype) if out_dtype is not None else x.dtype
    two_f = 2 * out_features

    x_itemsize = jnp.dtype(x.dtype).itemsize
    w_itemsize = jnp.dtype(weights.dtype).itemsize
    o_itemsize = jnp.dtype(out_dtype).itemsize

    # Phase-bias inputs: duplicated weights and the [0 | pi/2] bias row.
    w_cat = jnp.concatenate([weights, weights], axis=-1)
    phase = jnp.concatenate(
        [jnp.zeros((1, out_features), jnp.float32),
         jnp.full((1, out_features), np.float32(np.pi / 2))], axis=-1)

    # Adaptive row tile: ~10 MiB of blocks per grid step amortizes the
    # ~0.35 us/step pipeline overhead; capped so >= ~4 grid steps exist when
    # N is large enough (megacore sharding on v7x needs >1 step per TC).
    if tm is None:
        bytes_per_row = two_f * o_itemsize + in_features * x_itemsize
        tm = (10 << 20) // max(bytes_per_row, 1)
        tm = max(8, min(8192, (tm // 8) * 8))
        if n >= 32:
            quarter = -(-n // 4)                      # ceil(n / 4)
            tm = min(tm, max(8, ((quarter + 7) // 8) * 8))
    if tm >= n:
        tm = n                                        # single step; full-dim block
    else:
        tm = max(8, (tm // 8) * 8)                    # keep sublane alignment

    grid = (pl.cdiv(n, tm),)                          # ragged last block OK

    # Explicit scoped-VMEM budget: double-buffered blocks + headroom,
    # clamped well under v7x's 64 MiB physical VMEM (v5e/v6e have 128 MiB).
    block_bytes = (tm * in_features * x_itemsize
                   + in_features * two_f * w_itemsize
                   + two_f * 4
                   + tm * two_f * o_itemsize)
    vmem_limit = int(2 * block_bytes * 1.25) + (4 << 20)
    vmem_limit = max(16 << 20, min(vmem_limit, 40 << 20))

    cost = pl.CostEstimate(
        flops=2 * n * in_features * two_f,
        transcendentals=n * two_f,
        bytes_accessed=(n * in_features * x_itemsize
                        + in_features * two_f * w_itemsize
                        + two_f * 4
                        + n * two_f * o_itemsize),
    )

    return pl.pallas_call(
        _fourier_kernel,
        out_shape=jax.ShapeDtypeStruct((n, two_f), out_dtype),
        grid_spec=pltpu.PrefetchScalarGridSpec(
            num_scalar_prefetch=0,
            grid=grid,
            in_specs=[
                # row tile of x; in_features kept whole (equals full array dim)
                pl.BlockSpec((tm, in_features), lambda i: (i, 0)),
                # full duplicated weight matrix, same block every grid step
                pl.BlockSpec((in_features, two_f), lambda i: (0, 0)),
                # phase bias row, same block every grid step
                pl.BlockSpec((1, two_f), lambda i: (0, 0)),
            ],
            out_specs=pl.BlockSpec((tm, two_f), lambda i: (i, 0)),
        ),
        compiler_params=pltpu.CompilerParams(
            dimension_semantics=("parallel",),         # shard rows over v7x's 2 TCs
            vmem_limit_bytes=vmem_limit,
        ),
        cost_estimate=cost,
    )(x, w_cat, phase)


def init_fourier_weights(key, in_features, out_features, scale=1.0):
    # Matches: torch.randn(in_features, out_features) * np.pi * scale
    return (jax.random.normal(key, (in_features, out_features), dtype=jnp.float32)
            * np.pi * scale)


def _reference(x, w):
    # float64 numpy reference (independent of TPU matmul precision defaults).
    z = np.asarray(x, dtype=np.float64) @ np.asarray(w, dtype=np.float64)
    return np.concatenate([np.sin(z), np.cos(z)], axis=-1)


if __name__ == "__main__":
    key = jax.random.PRNGKey(0)
    k_x, k_w, k_x2, k_w2 = jax.random.split(key, 4)

    # Demo-scale PINN shapes: 128 collocation points, 2 input coords (x, t),
    # 64 Fourier features -> output (128, 128).  Adaptive tm -> 4 grid steps.
    N, IN_FEATURES, OUT_FEATURES = 128, 2, 64
    x = jax.random.normal(k_x, (N, IN_FEATURES), dtype=jnp.float32)
    w = init_fourier_weights(k_w, IN_FEATURES, OUT_FEATURES, scale=1.0)

    out = jax.block_until_ready(fourier_feature_embedding(x, w))
    np.testing.assert_allclose(np.asarray(out), _reference(x, w),
                               rtol=1e-5, atol=1e-5)
    assert out.shape == (N, 2 * OUT_FEATURES)

    # Lane-aligned features + explicit tm=64 -> ragged last block (200 = 3*64 + 8).
    N2, F2 = 200, 128
    x2 = jax.random.normal(k_x2, (N2, IN_FEATURES), dtype=jnp.float32)
    w2 = init_fourier_weights(k_w2, IN_FEATURES, F2, scale=1.0)
    out2 = jax.block_until_ready(fourier_feature_embedding(x2, w2, tm=64))
    np.testing.assert_allclose(np.asarray(out2), _reference(x2, w2),
                               rtol=1e-5, atol=1e-5)
    assert out2.shape == (N2, 2 * F2)

    # bf16-output lever (recommended on v5e, where f32 writeback is HBM-bound).
    out3 = jax.block_until_ready(
        fourier_feature_embedding(x2, w2, out_dtype=jnp.bfloat16))
    np.testing.assert_allclose(np.asarray(out3, dtype=np.float32),
                               _reference(x2, w2), rtol=2e-2, atol=2e-2)
    assert out3.shape == (N2, 2 * F2)

    print("KERNEL_OK")
</pallas_src>

<mosaic_0001>
module attributes {stable_mosaic.version = 11 : i64} {
  func.func @_fourier_kernel(%arg0: i32, %arg1: memref<32x2xf32, #tpu.memory_space<vmem>>, %arg2: memref<2x128xf32, #tpu.memory_space<vmem>>, %arg3: memref<1x128xf32, #tpu.memory_space<vmem>>, %arg4: memref<32x128xf32, #tpu.memory_space<vmem>>) attributes {dimension_semantics = [#tpu.dimension_semantics<parallel>], iteration_bounds = array<i64: 4>, scalar_prefetch = 0 : i64, scratch_operands = 0 : i64, tpu.core_type = #tpu.core_type<tc>, window_params = [{transform_indices = @transform_0, window_bounds = array<i64: 32, 2>}, {pipeline_mode = #tpu.pipeline_mode<synchronous>, transform_indices = @transform_1, window_bounds = array<i64: 2, 128>}, {pipeline_mode = #tpu.pipeline_mode<synchronous>, transform_indices = @transform_2, window_bounds = array<i64: 1, 128>}, {transform_indices = @transform_3, window_bounds = array<i64: 32, 128>}]} {
    %c0 = arith.constant 0 : index
    %c0_0 = arith.constant 0 : index
    %0 = vector.load %arg1[%c0, %c0_0] : memref<32x2xf32, #tpu.memory_space<vmem>>, vector<32x2xf32>
    %c0_1 = arith.constant 0 : index
    %c0_2 = arith.constant 0 : index
    %1 = vector.load %arg2[%c0_1, %c0_2] : memref<2x128xf32, #tpu.memory_space<vmem>>, vector<2x128xf32>
    %cst = arith.constant dense<0.000000e+00> : vector<32x128xf32>
    %2 = tpu.matmul %0, %1, %cst {dimension_numbers = #tpu.dot_dimension_numbers<[1], [0], [0], [1], [0, 0, 1, 1], [], []>} : vector<32x2xf32>, vector<2x128xf32>, vector<32x128xf32> -> vector<32x128xf32>
    %c0_3 = arith.constant 0 : index
    %c0_4 = arith.constant 0 : index
    %3 = vector.load %arg3[%c0_3, %c0_4] : memref<1x128xf32, #tpu.memory_space<vmem>>, vector<1x128xf32>
    %4 = vector.broadcast %3 : vector<1x128xf32> to vector<32x128xf32>
    %5 = arith.addf %2, %4 : vector<32x128xf32>
    %6 = math.sin %5 : vector<32x128xf32>
    %c0_5 = arith.constant 0 : index
    %c0_6 = arith.constant 0 : index
    %7 = vector.load %arg4[%c0_5, %c0_6] : memref<32x128xf32, #tpu.memory_space<vmem>>, vector<32x128xf32>
    tpu.vector_store %arg4[%c0_5, %c0_6], %6 {strides = array<i32>} : memref<32x128xf32, #tpu.memory_space<vmem>>, vector<32x128xf32>,
    return
  }
  func.func @transform_0(%arg0: i32) -> (i32, i32) {
    %c0_i32 = arith.constant 0 : i32
    %c0_i32_0 = arith.constant 0 : i32
    return %arg0, %c0_i32 : i32, i32
  }
  func.func @transform_1(%arg0: i32) -> (i32, i32) {
    %c0_i32 = arith.constant 0 : i32
    %c0_i32_0 = arith.constant 0 : i32
    %c0_i32_1 = arith.constant 0 : i32
    return %c0_i32, %c0_i32_0 : i32, i32
  }
  func.func @transform_2(%arg0: i32) -> (i32, i32) {
    %c0_i32 = arith.constant 0 : i32
    %c0_i32_0 = arith.constant 0 : i32
    %c0_i32_1 = arith.constant 0 : i32
    return %c0_i32, %c0_i32_0 : i32, i32
  }
  func.func @transform_3(%arg0: i32) -> (i32, i32) {
    %c0_i32 = arith.constant 0 : i32
    %c0_i32_0 = arith.constant 0 : i32
    return %arg0, %c0_i32 : i32, i32
  }
}

</mosaic_0001>

<bundles_post_ra>
// kernel: fourier_feature_embedding.1
= control target key start
LH: loop header
LB: loop body
LE: loop exit
PB: predicated region body
PF: predicated region fallthrough
CT: control target
= control target key end

     0   :  { %8 = vsyncpa [#allocation3], 0  ;;  %s1627_s0 = inlined_call_operand.vmem [shape: f32[128,2], index: 0, kind: input, shape index: {}]   ;;  %s1628_s1 = inlined_call_operand.vmem [shape: f32[2,128], index: 1, kind: input, shape index: {}]   ;;  %s1629_s2 = inlined_call_operand.vmem [shape: f32[1,128], index: 2, kind: input, shape index: {}]   ;;  %s1630_s3 = inlined_call_operand.hbm [shape: f32[128,128], index: 3, kind: output, shape index: {}]  }
   0x1   :  { %10 = vsyncpa [#allocation3 + $0x1], 0  ;;  %s1104_s12 = smov 0   ;;  %s1106_s13 = smov 0  }
   0x2   :  { %s1108_s14 = smov 0   ;;  %s1110_s15 = smov 0  }
   0x3 LB: > { %s1125_s16 = sadd.s32 4294967295, %s1073_s15   ;;  %s929_s17 = sadd.s32 4294967294, %s1073_s15   ;;  %s1073_s15 = sphi %s1110_s15, %s1642_s15   ;;  %s1069_s14 = sphi %s1108_s14, %s1641_s14   ;;  %s1065_s13 = sphi %s1106_s13, %s1640_s13   ;;  %s1061_s12 = sphi %s1104_s12, %s1639_s12  }
   0x4   : > { %s1129_s18 = sadd.s32 1, %s1073_s15   ;;  %s91_s19 = sadd.s32 1, %s1069_s14 }
   0x5   : > { %s88_s20 = ssub.s32 %s1073_s15, %s1129_s18  ;;  %p101_p0 = scmp.ne.s32.totalorder %s1069_s14, %s1065_s13 }
   0x6   : > { %p89_p1 = scmp.eq.s32.totalorder %s88_s20, 0  ;;  %p102_p2 = scmp.eq.s32.totalorder %s1125_s16, 3 }
   0x7   : > { %p107_p3 = scmp.ne.s32.totalorder %s1065_s13, %s1061_s12  ;;  %p108_p4 = scmp.eq.s32.totalorder %s929_s17, 3 }
   0x8   : > { %s1140_s21 = scalar_select %p89_p1, %s1069_s14, %s91_s19  }
   0x9   : > { %p1142_p5 = por %p102_p2, %p101_p0  ;;  %p1146_p6 = por %p108_p4, %p107_p3 }
   0xa   : > { %p932_p7 = scmp.ge.s32.totalorder %s1073_s15, 1  ;;  %p141_p8 = scmp.lt.s32.totalorder %s1073_s15, 5 }
   0xc   : > { %p142_p9 = pnand %p932_p7, %p141_p8 }
   0xd   : > { %s934_s26 = sshll.u32 (!%p142_p9), %s1125_s16, 2  ;;  %s162_s6 = sand.u32 (!%p142_p9), 1, %s1065_s13  }
   0xe   : > { %145 = sbr.rel (%p142_p9) target bundleno = 346 (0x15a), region = 32  ;;  %p166_p10 = scmp.lt.s32.totalorder (!%p142_p9), %s934_s26, 15 }
   0xf   : > { %s933_s7 = sshll.u32 (!%p142_p9), %s162_s6, 5  ;;  %s958_s9 = sshll.u32 (!%p142_p9), %s1125_s16, 5 }
  0x10   : > { %s1476_s8 = scalar_lea.vmem (!%p142_p9), [#allocation2], %s933_s7  ;;  %s863_s17 = scalar_lea.hbm (!%p142_p9), %s1630_s3, %s958_s9 }
  0x11   : > { %s864_s19 = sshll.u32 (!%p142_p9), %s1476_s8, 4  ;;  %s866_s20 = sshll.u32 (!%p142_p9), %s863_s17, 4  ;;  %s865_s19 = int_to_ptr.vmem [resolvable:$true] %s864_s19  ;;  %s867_s20 = int_to_ptr.hbm [resolvable:$true] %s866_s20 }
  0x12   : > { %s852_s16 = scalar_lea.sflag (!%p142_p9), [#allocation3], %s162_s6  ;;  %s1025_s24 = sshra.s32 (!%p142_p9), %s867_s20, 4  ;;  %s1026_s24 = int_to_ptr.hbm [resolvable:$true] %s1025_s24 }
  0x13   : > { %v176_v0 = vld [vmem:[%s1628_s1] sm:$0x3]  ;;  %vm194_vm0 = vcmask 1041408   ;;  %s1644_s26 = smov (!%p166_p10, %s934_s26), 15  ;;  %vm181_vm1 = vcmask 15360   ;;  %s1027_s25 = scalar_lea.hbm %s1026_s24, 32 }
  0x14   : > { %936 = vmatpush.msk.msra.mxu0 %vm194_vm0, %v176_v0  ;;  %959 = vmatpush.msk.msra.mxu1 %vm194_vm0, %v176_v0  ;;  %s935_s27 = sshll.u32 %s1644_s26, 3  ;;  %v1162_v5 = vld [vmem:[%s1629_s2] ss:$0 sm:$0xff]  ;;  %v1075_v33 = vmov 683565275   ;;  %p1028_p11 = scmp.ne.s32.totalorder %s1026_s24, %s1027_s25 }
  0x15   : > { %960 = vmatpush.msk.msra.mxu2 %vm194_vm0, %v176_v0  ;;  %961 = vmatpush.msk.msra.mxu3 %vm194_vm0, %v176_v0  ;;  %s169_s30 = scalar_lea.vmem %s1627_s0, %s935_s27  ;;  %v1076_v35 = vmov 2475754826   ;;  %v1077_v37 = vmov 2131351028   ;;  %v1078_v39 = vmov 2102212464   ;;  %p1032_p0 = scmp.lt.s32.totalorder %s1026_s24, %s1630_s3 }
  0x16   : > { %v172_v1 = vld [vmem:[%s169_s30] sm:$0xff]  ;;  %v173_v2 = vld [vmem:[%s169_s30 + $0x8] sm:$0xff]  ;;  %v174_v3 = vld [vmem:[%s169_s30 + $0x10] sm:$0xff]  ;;  %v1079_v41 = vmov 920167782   ;;  %p1029_p12 = pnand %p1028_p11, %p1142_p5  ;;  %s1031_s28 = scalar_lea.hbm %s1630_s3, 128 }
  0x17   : > { %937 = vmatmul.msk.f32.vlgmr.msra.gmra.mxu0 %vm181_vm1, %v172_v1  ;;  %938 = vmatmul.msk.f32.vlgmr.msra.gmra.mxu1 %vm181_vm1, %v173_v2  ;;  %v175_v4 = vld [vmem:[%s169_s30 + $0x18] sm:$0xff]  ;;  %v1080_v50 = vmov 1326507024   ;;  %p1033_p1 = scmp.lt.s32.totalorder %s1031_s28, %s1027_s25 }
  0x18   : > { %939 = vmatmul.msk.f32.vlgmr.msra.gmra.mxu2 %vm181_vm1, %v174_v3  ;;  %940 = vmatmul.msk.f32.vlgmr.msra.gmra.mxu3 %vm181_vm1, %v175_v4  ;;  %p1030_p13 = pneg %p1029_p12 }
  0x19   : > { %p1034_p2 = por %p1033_p1, %p1032_p0 }
  0x1b   : > { %p1035_p3 = pnand %p1034_p2, %p1030_p13 }
  0x94   : > { %v215_v6 = vpop.f32.mrf.mxu0  ;;  %v218_v7 = vpop.f32.mrf.mxu1 }
  0x95   : > { %v1165_v8 = vadd.f32 %v1162_v5, %v215_v6  ;;  %v1168_v9 = vadd.f32 %v1162_v5, %v218_v7 }
  0x97   : > { %v227_v10 = vand.u32 2147483647, %v1165_v8  ;;  %v230_v11 = vand.u32 2139095040, %v1165_v8  ;;  %v382_v12 = vand.u32 2147483647, %v1168_v9  ;;  %v385_v13 = vand.u32 2139095040, %v1168_v9 }
  0x99   : > { %v231_v14 = vshrl.u32 %v230_v11, 23  ;;  %v234_v15 = vand.u32 8388607, %v227_v10  ;;  %v386_v16 = vshrl.u32 %v385_v13, 23  ;;  %v389_v20 = vand.u32 8388607, %v382_v12 }
  0x9b   : > { %v941_v17 = vadd.s32 4294967169, %v231_v14  ;;  %v235_v18 = vor.u32 8388608, %v234_v15  ;;  %v944_v19 = vadd.s32 4294967169, %v386_v16  ;;  %v221_v23 = vpop.f32.mrf.mxu2  ;;  %v390_v26 = vor.u32 8388608, %v389_v20 }
  0x9c   : > { %v1185_v31 = vadd.f32 %v1162_v5, %v221_v23 }
  0x9d   : > { %v237_v21 = vadd.s32 1, %v941_v17  ;;  %v392_v22 = vadd.s32 1, %v944_v19  ;;  %v1178_v25 = vshll.u32 %v235_v18, 8  ;;  %v1193_v44 = vshll.u32 %v390_v26, 8 }
  0x9e   : > { %v540_v58 = vand.u32 2139095040, %v1185_v31 }
  0x9f   : > { %vm238_vm2 = vcmp.gt.s32.totalorder %v237_v21, 0  ;;  %vm393_vm3 = vcmp.gt.s32.totalorder %v392_v22, 0  ;;  %v276_v43 = vand.u32 65535, %v1178_v25  ;;  %v277_v48 = vshrl.u32 %v1178_v25, 16 }
  0xa0   : > { %v239_v24 = vsel %vm238_vm2, %v237_v21, 0  ;;  %v394_v28 = vsel %vm393_vm3, %v392_v22, 0  ;;  %v1237_v14 = vand.u32 65535, %v1193_v44 }
  0xa1   : > { %v241_v27 = vand.u32 31, %v239_v24  ;;  %v1180_v29 = vshrl.u32 %v239_v24, 5  ;;  %v1182_v30 = vand.u32 31, %v394_v28  ;;  %v1243_v21 = vshrl.u32 %v394_v28, 5 }
  0xa3   : > { %v242_v32 = vsub.s32 32, %v241_v27  ;;  %v244_v34 = vshll.u32 %v1075_v33, %v241_v27  ;;  %v247_v36 = vshll.u32 %v1076_v35, %v241_v27  ;;  %v250_v38 = vshll.u32 %v1077_v37, %v241_v27 }
  0xa4   : > { %v253_v40 = vshll.u32 %v1078_v39, %v241_v27  ;;  %v256_v42 = vshll.u32 %v1079_v41, %v241_v27  ;;  %vm259_vm4 = vcmp.lt.s32.totalorder %v1180_v29, 1  ;;  %vm262_vm5 = vcmp.lt.s32.totalorder %v1180_v29, 4 }
  0xa5   : > { %v245_v45 = vshrl.u32 %v1076_v35, %v242_v32  ;;  %v248_v46 = vshrl.u32 %v1077_v37, %v242_v32  ;;  %v251_v47 = vshrl.u32 %v1078_v39, %v242_v32  ;;  %v254_v49 = vshrl.u32 %v1079_v41, %v242_v32 }
  0xa6   : > { %v257_v51 = vshrl.u32 %v1080_v50, %v242_v32  ;;  %v1204_v55 = vsub.s32 32, %v1182_v30  ;;  %vm261_vm6 = vcmp.lt.s32.totalorder %v1180_v29, 3  ;;  %v243_v59 = vshrl.u32 %v1075_v33, %v242_v32 }
  0xa7   : > { %v246_v52 = vor.u32 %v245_v45, %v244_v34  ;;  %v249_v53 = vor.u32 %v248_v46, %v247_v36  ;;  %v252_v54 = vor.u32 %v251_v47, %v250_v38  ;;  %v255_v56 = vor.u32 %v254_v49, %v253_v40 }
  0xa8   : > { %v258_v57 = vor.u32 %v257_v51, %v256_v42  ;;  %vm260_vm7 = vcmp.lt.s32.totalorder %v1180_v29, 2  ;;  %v399_v0 = vshll.u32 %v1075_v33, %v1182_v30  ;;  %v402_v1 = vshll.u32 %v1076_v35, %v1182_v30 }
  0xa9   : > { %v267_v60 = vsel %vm259_vm4, %v246_v52, %v249_v53  ;;  %v271_v61 = vsel %vm259_vm4, %v249_v53, %v252_v54  ;;  %v268_v62 = vsel %vm262_vm5, %v255_v56, 920167782  ;;  %v264_v2 = vsel %vm262_vm5, %v252_v54, 2102212464 }
  0xaa   : > { %v272_v63 = vsel %vm262_vm5, %v258_v57, 1326507024  ;;  %v269_v3 = vsel %vm261_vm6, %v252_v54, %v268_v62  ;;  %v400_v6 = vshrl.u32 %v1076_v35, %v1204_v55  ;;  %v403_v13 = vshrl.u32 %v1077_v37, %v1204_v55 }
  0xab   : > { %v273_v4 = vsel %vm261_vm6, %v255_v56, %v272_v63  ;;  %v270_v7 = vsel %vm260_vm7, %v267_v60, %v269_v3  ;;  %v263_v19 = vsel %vm259_vm4, %v243_v59, %v246_v52  ;;  %v265_v20 = vsel %vm261_vm6, %v249_v53, %v264_v2 }
  0xac   : > { %v274_v11 = vsel %vm260_vm7, %v271_v61, %v273_v4  ;;  %v300_v17 = vand.u32 65535, %v270_v7  ;;  %v301_v18 = vshrl.u32 %v270_v7, 16  ;;  %v1245_v22 = vor.u32 %v400_v6, %v399_v0 }
  0xad   : > { %v278_v15 = vand.u32 65535, %v274_v11  ;;  %v279_v16 = vshrl.u32 %v274_v11, 16  ;;  %v1247_v26 = vor.u32 %v403_v13, %v402_v1  ;;  %v405_v27 = vshll.u32 %v1077_v37, %v1182_v30 }
  0xae   : > { %v303_v34 = vmul.u32 %v301_v18, %v276_v43  ;;  %v304_v36 = vmul.u32 %v300_v17, %v277_v48  ;;  %v406_v38 = vshrl.u32 %v1078_v39, %v1204_v55  ;;  %v302_v45 = vmul.u32 %v300_v17, %v276_v43 }
  0xaf   : > { %v281_v23 = vmul.u32 %v279_v16, %v276_v43  ;;  %v282_v24 = vmul.u32 %v278_v15, %v277_v48  ;;  %v280_v32 = vmul.u32 %v278_v15, %v276_v43  ;;  %v283_v40 = vmul.u32 %v279_v16, %v277_v48 }
  0xb0   : > { %v305_v28 = vmul.u32 %v301_v18, %v277_v48  ;;  %v306_v51 = vshll.u32 %v303_v34, 16  ;;  %v308_v53 = vshll.u32 %v304_v36, 16  ;;  %v408_v54 = vshll.u32 %v1078_v39, %v1182_v30 }
  0xb1   : > { %v284_v42 = vshll.u32 %v281_v23, 16  ;;  %v285_v46 = vshrl.u32 %v281_v23, 16  ;;  %v286_v47 = vshll.u32 %v282_v24, 16  ;;  %v287_v49 = vshrl.u32 %v282_v24, 16 }
  0xb2   : > { %v1081_v56 = vmov 0   ;;  %vm310_vm9 = vc.u32 %v302_v45, %v306_v51  ;;  %v312_v59 = vadd.s32 %v306_v51, %v302_v45  ;;  %v409_v60 = vshrl.u32 %v1079_v41, %v1204_v55 }
  0xb3   : > { %vm288_vm8 = vc.u32 %v280_v32, %v284_v42  ;;  %v290_v52 = vadd.s32 %v284_v42, %v280_v32  ;;  %v311_v48 = vsel %vm310_vm9, 1, %v1081_v56  ;;  %v411_v61 = vshll.u32 %v1079_v41, %v1182_v30 }
  0xb4   : > { %v289_v57 = vsel %vm288_vm8, 1, %v1081_v56  ;;  %v313_v63 = vadd.s32 %v311_v48, %v305_v28  ;;  %vm314_vm11 = vc.u32 %v312_v59, %v308_v53  ;;  %v407_v0 = vor.u32 %v406_v38, %v405_v27 }
  0xb5   : > { %v291_v43 = vadd.s32 %v289_v57, %v283_v40  ;;  %vm292_vm10 = vc.u32 %v290_v52, %v286_v47  ;;  %v315_v2 = vsel %vm314_vm11, 1, %v1081_v56  ;;  %v410_v3 = vor.u32 %v409_v60, %v408_v54 }
  0xb6   : > { %v293_v62 = vsel %vm292_vm10, 1, %v1081_v56  ;;  %v412_v4 = vshrl.u32 %v1080_v50, %v1204_v55  ;;  %v307_v6 = vshrl.u32 %v303_v34, 16  ;;  %v317_v7 = vadd.s32 %v315_v2, %v313_v63 }
  0xb7   : > { %v295_v1 = vadd.s32 %v293_v62, %v291_v43  ;;  %vm414_vm12 = vcmp.lt.s32.totalorder %v1243_v21, 1  ;;  %vm416_vm13 = vcmp.lt.s32.totalorder %v1243_v21, 3  ;;  %v309_v30 = vshrl.u32 %v304_v36, 16 }
  0xb8   : > { %v413_v13 = vor.u32 %v412_v4, %v411_v61  ;;  %vm417_vm14 = vcmp.lt.s32.totalorder %v1243_v21, 4  ;;  %v1268_v15 = vadd.s32 %v312_v59, %v308_v53  ;;  %v318_v16 = vadd.s32 %v317_v7, %v307_v6 }
  0xb9   : > { %v296_v11 = vadd.s32 %v295_v1, %v285_v46  ;;  %v422_v17 = vsel %vm414_vm12, %v1245_v22, %v1247_v26  ;;  %v423_v18 = vsel %vm417_vm14, %v410_v3, 920167782  ;;  %vm415_vm15 = vcmp.lt.s32.totalorder %v1243_v21, 2 }
  0xba   : > { %v424_v24 = vsel %vm416_vm13, %v407_v0, %v423_v18  ;;  %v426_v27 = vsel %vm414_vm12, %v1247_v26, %v407_v0  ;;  %v266_v32 = vsel %vm260_vm7, %v263_v19, %v265_v20  ;;  %v319_v34 = vadd.s32 %v318_v16, %v309_v30 }
  0xbb   : > { %v1276_v23 = vadd.s32 %v296_v11, %v287_v49  ;;  %v425_v36 = vsel %vm415_vm15, %v422_v17, %v424_v24  ;;  %v427_v38 = vsel %vm417_vm14, %v413_v13, 1326507024  ;;  %v432_v42 = vshrl.u32 %v1193_v44, 16 }
  0xbc   : > { %v428_v40 = vsel %vm416_vm13, %v410_v3, %v427_v38  ;;  %v455_v45 = vand.u32 65535, %v425_v36  ;;  %v323_v28 = vadd.s32 1, %v319_v34  ;;  %v456_v19 = vshrl.u32 %v425_v36, 16 }
  0xbd   : > { %vm322_vm0 = vc.u32 %v1276_v23, %v1268_v15  ;;  %v429_v29 = vsel %vm415_vm15, %v426_v27, %v428_v40  ;;  %v541_v20 = vshrl.u32 %v540_v58, 23  ;;  %v320_v46 = vmul.u32 %v1178_v25, %v266_v32 }
  0xbe   : > { %v433_v47 = vand.u32 65535, %v429_v29  ;;  %v434_v49 = vshrl.u32 %v429_v29, 16  ;;  %v324_v51 = vsel %vm322_vm0, %v323_v28, %v319_v34  ;;  %v398_v52 = vshrl.u32 %v1075_v33, %v1204_v55 }
  0xbf   : > { %v458_v53 = vmul.u32 %v456_v19, %v1237_v14  ;;  %v459_v54 = vmul.u32 %v455_v45, %v432_v42  ;;  %v325_v57 = vadd.s32 %v324_v51, %v320_v46  ;;  %v419_v59 = vsel %vm417_vm14, %v407_v0, 2102212464 }
  0xc0   : > { %v436_v60 = vmul.u32 %v434_v49, %v1237_v14  ;;  %v437_v43 = vmul.u32 %v433_v47, %v432_v42  ;;  %v457_v58 = vmul.u32 %v455_v45, %v1237_v14  ;;  %v460_v48 = vmul.u32 %v456_v19, %v432_v42 }
  0xc1   : > { %v461_v25 = vshll.u32 %v458_v53, 16  ;;  %v947_v61 = vadd.s32 4294967169, %v541_v20  ;;  %v326_v62 = vadd.s32 536870912, %v325_v57  ;;  %v435_v63 = vmul.u32 %v433_v47, %v1237_v14 }
  0xc2   : > { %v438_v1 = vmul.u32 %v434_v49, %v432_v42  ;;  %v439_v55 = vshll.u32 %v436_v60, 16  ;;  %v441_v2 = vshll.u32 %v437_v43, 16  ;;  %v463_v3 = vshll.u32 %v459_v54, 16 }
  0xc3   : > { %vm465_vm1 = vc.u32 %v457_v58, %v461_v25  ;;  %v467_v4 = vadd.s32 %v461_v25, %v457_v58  ;;  %v327_v6 = vshrl.u32 %v326_v62, 30  ;;  %v537_v13 = vand.u32 2147483647, %v1185_v31 }
  0xc4   : > { %vm443_vm2 = vc.u32 %v435_v63, %v439_v55  ;;  %v445_v0 = vadd.s32 %v439_v55, %v435_v63  ;;  %v466_v7 = vsel %vm465_vm1, 1, %v1081_v56  ;;  %v418_v14 = vsel %vm414_vm12, %v398_v52, %v1245_v22 }
  0xc5   : > { %v444_v11 = vsel %vm443_vm2, 1, %v1081_v56  ;;  %v468_v30 = vadd.s32 %v466_v7, %v460_v48  ;;  %vm469_vm3 = vc.u32 %v467_v4, %v463_v3  ;;  %v328_v16 = vshll.u32 %v327_v6, 30 }
  0xc6   : > { %v446_v17 = vadd.s32 %v444_v11, %v438_v1  ;;  %vm447_vm4 = vc.u32 %v445_v0, %v441_v2  ;;  %v420_v18 = vsel %vm416_vm13, %v1247_v26, %v419_v59  ;;  %v470_v27 = vsel %vm469_vm3, 1, %v1081_v56 }
  0xc7   : > { %v448_v24 = vsel %vm447_vm4, 1, %v1081_v56  ;;  %v547_v32 = vadd.s32 1, %v947_v61  ;;  %v329_v34 = vsub.s32 %v325_v57, %v328_v16  ;;  %v440_v36 = vshrl.u32 %v436_v60, 16 }
  0xc8   : > { %v450_v38 = vadd.s32 %v448_v24, %v446_v17  ;;  %v472_v40 = vadd.s32 %v470_v27, %v468_v30  ;;  %vm229_vm5 = vcmp.lt.s32.totalorder %v1165_v8, 0  ;;  %v351_v42 = vsub.s32 4, %v327_v6 }
  0xc9   : > { %v462_v45 = vshrl.u32 %v458_v53, 16  ;;  %vm548_vm6 = vcmp.gt.s32.totalorder %v547_v32, 0  ;;  %vm330_vm7 = vcmp.lt.s32.totalorder %v329_v34, 0  ;;  %v331_v22 = vsub.s32 0, %v329_v34 }
  0xca   : > { %v442_v28 = vshrl.u32 %v437_v43, 16  ;;  %v451_v29 = vadd.s32 %v450_v38, %v440_v36  ;;  %v421_v26 = vsel %vm415_vm15, %v418_v14, %v420_v18  ;;  %v464_v19 = vshrl.u32 %v459_v54, 16 }
  0xcb   : > { %v473_v20 = vadd.s32 %v472_v40, %v462_v45  ;;  %v549_v46 = vsel %vm548_vm6, %v547_v32, 0  ;;  %v332_v47 = vsel %vm330_vm7, %v331_v22, %v329_v34  ;;  %v1324_v51 = vadd.s32 %v467_v4, %v463_v3 }
  0xcc   : > { %v1322_v49 = vadd.s32 %v451_v29, %v442_v28  ;;  %v544_v52 = vand.u32 8388607, %v537_v13  ;;  %v333_v53 = vclz %v332_v47  ;;  %v352_v57 = vsel %vm229_vm5, %v351_v42, %v327_v6 }
  0xcd   : > { %v474_v59 = vadd.s32 %v473_v20, %v464_v19  ;;  %v551_v60 = vand.u32 31, %v549_v46  ;;  %vm1332_vm8 = vcmp.le.f32.partialorder %v227_v10, 0.7853982  ;;  %v321_v54 = vadd.s32 %v1268_v15, %v1276_v23 }
  0xce   : > { %v475_v43 = vmul.u32 %v1193_v44, %v421_v26  ;;  %v942_v58 = vadd.s32 4294967294, %v333_v53  ;;  %vm477_vm9 = vc.u32 %v1322_v49, %v1324_v51  ;;  %v354_v61 = vsel %vm1332_vm8, 0, %v352_v57 }
  0xcf   : > { %v478_v48 = vadd.s32 1, %v474_v59  ;;  %v552_v25 = vsub.s32 32, %v551_v60  ;;  %v545_v62 = vor.u32 8388608, %v544_v52  ;;  %v1343_v63 = vshrl.u32 %v549_v46, 5 }
  0xd0   : > { %v554_v10 = vshll.u32 %v1075_v33, %v551_v60  ;;  %vm943_vm10 = vcmp.lt.s32.totalorder %v942_v58, 0  ;;  %v557_v44 = vshll.u32 %v1076_v35, %v551_v60  ;;  %v560_v3 = vshll.u32 %v1077_v37, %v551_v60 }
  0xd1   : > { %v479_v1 = vsel %vm477_vm9, %v478_v48, %v474_v59  ;;  %v555_v15 = vshrl.u32 %v1076_v35, %v552_v25  ;;  %v336_v23 = vsel %vm943_vm10, 0, %v942_v58  ;;  %v558_v2 = vshrl.u32 %v1077_v37, %v552_v25 }
  0xd2   : > { %v480_v55 = vadd.s32 %v479_v1, %v475_v43  ;;  %v337_v4 = vsub.s32 32, %v336_v23  ;;  %v341_v6 = vsub.s32 4294967266, %v336_v23  ;;  %v561_v0 = vshrl.u32 %v1078_v39, %v552_v25 }
  0xd3   : > { %v563_v7 = vshll.u32 %v1078_v39, %v551_v60  ;;  %v338_v11 = vshll.u32 %v329_v34, %v336_v23  ;;  %v556_v16 = vor.u32 %v555_v15, %v554_v10  ;;  %v564_v14 = vshrl.u32 %v1079_v41, %v552_v25 }
  0xd4   : > { %v481_v30 = vadd.s32 536870912, %v480_v55  ;;  %v339_v17 = vshrl.u32 %v321_v54, %v337_v4  ;;  %v342_v18 = vadd.s32 127, %v341_v6  ;;  %v1353_v24 = vor.u32 %v558_v2, %v557_v44 }
  0xd5   : > { %v567_v27 = vshrl.u32 %v1080_v50, %v552_v25  ;;  %v565_v36 = vor.u32 %v564_v14, %v563_v7  ;;  %v1358_v38 = vshll.u32 %v545_v62, 8  ;;  %v562_v45 = vor.u32 %v561_v0, %v560_v3  ;;  %v224_v62 = vpop.f32.mrf.mxu3 }
  0xd6   : > { %v1356_v32 = vshrl.u32 %v481_v30, 30  ;;  %v340_v40 = vor.u32 %v339_v17, %v338_v11  ;;  %v343_v42 = vshll.u32 %v342_v18, 23  ;;  %v566_v34 = vshll.u32 %v1079_v41, %v551_v60 }
  0xd7   : > { %v371_v22 = vadd.s32 3, %v354_v61  ;;  %vm569_vm11 = vcmp.lt.s32.totalorder %v1343_v63, 1  ;;  %vm572_vm12 = vcmp.lt.s32.totalorder %v1343_v63, 4  ;;  %vm571_vm13 = vcmp.lt.s32.totalorder %v1343_v63, 3 }
  0xd8   : > { %v483_v28 = vshll.u32 %v1356_v32, 30  ;;  %v344_v29 = vor.u32 4788187, %v343_v42  ;;  %v568_v26 = vor.u32 %v567_v27, %v566_v34  ;;  %v577_v19 = vsel %vm569_vm11, %v556_v16, %v1353_v24 }
  0xd9   : > { %v578_v46 = vsel %vm572_vm12, %v565_v36, 920167782  ;;  %v586_v47 = vand.u32 65535, %v1358_v38  ;;  %v347_v53 = vcvt.s32.f32 %v340_v40  ;;  %vm570_vm14 = vcmp.lt.s32.totalorder %v1343_v63, 2 }
  0xda   : > { %v1367_v20 = vsub.s32 %v480_v55, %v483_v28  ;;  %v345_v52 = vand.u32 2147483647, %v344_v29  ;;  %v579_v57 = vsel %vm571_vm13, %v562_v45, %v578_v46  ;;  %v587_v54 = vshrl.u32 %v1358_v38, 16 }
  0xdb   : > { %v580_v60 = vsel %vm570_vm14, %v577_v19, %v579_v57  ;;  %v1381_v58 = vand.u32 3, %v371_v22  ;;  %v581_v48 = vsel %vm569_vm11, %v1353_v24, %v562_v45  ;;  %v582_v61 = vsel %vm572_vm12, %v568_v26, 1326507024 }
  0xdc   : > { %vm485_vm15 = vcmp.lt.s32.totalorder %v1367_v20, 0  ;;  %v486_v59 = vsub.s32 0, %v1367_v20  ;;  %v348_v43 = vmul.f32 %v347_v53, %v345_v52  ;;  %v553_v1 = vshrl.u32 %v1075_v33, %v552_v25 }
  0xdd   : > { %v583_v15 = vsel %vm571_vm13, %v565_v36, %v582_v61  ;;  %v610_v44 = vand.u32 65535, %v580_v60  ;;  %v611_v3 = vshrl.u32 %v580_v60, 16  ;;  %v476_v4 = vadd.s32 %v1324_v51, %v1322_v49 }
  0xde   : > { %v487_v10 = vsel %vm485_vm15, %v486_v59, %v1367_v20  ;;  %v349_v23 = vxor.u32 2147483648, %v348_v43  ;;  %v584_v2 = vsel %vm570_vm14, %v581_v48, %v583_v15  ;;  %v506_v6 = vsub.s32 4, %v1356_v32 }
  0xdf   : > { %v488_v55 = vclz %v487_v10  ;;  %v588_v0 = vand.u32 65535, %v584_v2  ;;  %v1398_v7 = vadd.f32 %v1162_v5, %v224_v62  ;;  %v1404_v30 = vsel %vm569_vm11, %v553_v1, %v556_v16 }
  0xe0   : > { %v350_v25 = vsel %vm229_vm5, %v349_v23, %v348_v43  ;;  %v589_v14 = vshrl.u32 %v584_v2, 16  ;;  %v1413_v49 = vsel %vm572_vm12, %v562_v45, 2102212464  ;;  %v612_v51 = vmul.u32 %v610_v44, %v586_v47 }
  0xe1   : > { %v945_v11 = vadd.s32 4294967294, %v488_v55  ;;  %v1409_v17 = vsel %vm1332_vm8, %v1165_v8, %v350_v25  ;;  %v592_v5 = vmul.u32 %v588_v0, %v587_v54  ;;  %v1417_v36 = vmul.u32 %v611_v3, %v586_v47 }
  0xe2   : > { %v355_v18 = vmul.f32 %v1409_v17, %v1409_v17  ;;  %v591_v27 = vmul.u32 %v589_v14, %v586_v47  ;;  %v590_v40 = vmul.u32 %v588_v0, %v586_v47  ;;  %v593_v42 = vmul.u32 %v589_v14, %v587_v54 }
  0xe3   : > { %vm946_vm0 = vcmp.lt.s32.totalorder %v945_v11, 0  ;;  %v1419_v34 = vmul.u32 %v610_v44, %v587_v54  ;;  %v596_v29 = vshll.u32 %v592_v5, 16  ;;  %vm384_vm1 = vcmp.lt.s32.totalorder %v1168_v9, 0 }
  0xe4   : > { %v491_v16 = vsel %vm946_vm0, 0, %v945_v11  ;;  %v356_v21 = vmul.f32 -0.001358992, %v355_v18  ;;  %v363_v22 = vmul.f32 -0.00019511016, %v355_v18  ;;  %v594_v26 = vshll.u32 %v591_v27, 16 }
  0xe5   : > { %v492_v28 = vsub.s32 32, %v491_v16  ;;  %v496_v45 = vsub.s32 4294967266, %v491_v16  ;;  %v597_v19 = vshrl.u32 %v592_v5, 16  ;;  %v615_v46 = vmul.u32 %v611_v3, %v587_v54 }
  0xe6   : > { %v357_v52 = vadd.f32 0.041655596, %v356_v21  ;;  %v364_v53 = vadd.f32 0.008332121, %v363_v22  ;;  %v493_v57 = vshll.u32 %v1367_v20, %v491_v16  ;;  %vm598_vm2 = vc.u32 %v590_v40, %v594_v26 }
  0xe7   : > { %v494_v59 = vshrl.u32 %v476_v4, %v492_v28  ;;  %v497_v60 = vadd.s32 127, %v496_v45  ;;  %v600_v47 = vadd.s32 %v594_v26, %v590_v40  ;;  %v616_v43 = vshll.u32 %v1417_v36, 16 }
  0xe8   : > { %v358_v48 = vmul.f32 %v357_v52, %v355_v18  ;;  %v365_v61 = vmul.f32 %v364_v53, %v355_v18  ;;  %v599_v10 = vsel %vm598_vm2, 1, %v1081_v56  ;;  %vm1427_vm3 = vcmp.le.f32.partialorder %v382_v12, 0.7853982 }
  0xe9   : > { %v495_v62 = vor.u32 %v494_v59, %v493_v57  ;;  %v498_v54 = vshll.u32 %v497_v60, 23  ;;  %v595_v15 = vshrl.u32 %v591_v27, 16  ;;  %v601_v20 = vadd.s32 %v599_v10, %v593_v42 }
  0xea   : > { %vm602_vm4 = vc.u32 %v600_v47, %v596_v29  ;;  %v359_v44 = vadd.f32 -0.4999988, %v358_v48  ;;  %v366_v23 = vadd.f32 -0.16666654, %v365_v61  ;;  %v618_v2 = vshll.u32 %v1419_v34, 16 }
  0xeb   : > { %v603_v55 = vsel %vm602_vm4, 1, %v1081_v56  ;;  %vm374_vm5 = vcmp.eq.s32.totalorder %v1381_v58, 0  ;;  %v499_v3 = vor.u32 4788187, %v498_v54  ;;  %vm620_vm6 = vc.u32 %v612_v51, %v616_v43 }
  0xec   : > { %v605_v4 = vadd.s32 %v603_v55, %v601_v20  ;;  %v622_v12 = vadd.s32 %v616_v43, %v612_v51  ;;  %v360_v0 = vmul.f32 %v359_v44, %v355_v18  ;;  %v367_v25 = vmul.f32 %v366_v23, %v355_v18 }
  0xed   : > { %vm373_vm7 = vcmp.lt.s32.totalorder %v1381_v58, 2  ;;  %v502_v11 = vcvt.s32.f32 %v495_v62  ;;  %v621_v14 = vsel %vm620_vm6, 1, %v1081_v56  ;;  %v500_v5 = vand.u32 2147483647, %v499_v3 }
  0xee   : > { %v606_v27 = vadd.s32 %v605_v4, %v595_v15  ;;  %v623_v16 = vadd.s32 %v621_v14, %v615_v46  ;;  %vm624_vm8 = vc.u32 %v622_v12, %v618_v2  ;;  %v361_v40 = vadd.f32 1.0, %v360_v0 }
  0xef   : > { %v368_v42 = vadd.f32 1.0, %v367_v25  ;;  %v507_v51 = vsel %vm384_vm1, %v506_v6, %v1356_v32  ;;  %v625_v18 = vsel %vm624_vm8, 1, %v1081_v56  ;;  %v503_v21 = vmul.f32 %v502_v11, %v500_v5 }
  0xf0   : > { %v1443_v22 = vadd.s32 %v606_v27, %v597_v19  ;;  %v617_v28 = vshrl.u32 %v1417_v36, 16  ;;  %v627_v29 = vadd.s32 %v625_v18, %v623_v16  ;;  %v378_v26 = vxor.u32 2147483648, %v361_v40 }
  0xf1   : > { %v369_v45 = vmul.f32 %v368_v42, %v1409_v17  ;;  %v575_v46 = vsel %vm571_vm13, %v1353_v24, %v1413_v49  ;;  %v695_v52 = vand.u32 2139095040, %v1398_v7  ;;  %v504_v32 = vxor.u32 2147483648, %v503_v21 }
  0xf2   : > { %v619_v6 = vshrl.u32 %v1419_v34, 16  ;;  %v1455_v19 = vadd.s32 %v622_v12, %v618_v2  ;;  %v628_v53 = vadd.s32 %v627_v29, %v617_v28  ;;  %vm377_vm9 = vcmp.eq.s32.totalorder %v1381_v58, 2 }
  0xf3   : > { %v375_v36 = vxor.u32 2147483648, %v369_v45  ;;  %v509_v17 = vsel %vm1427_vm3, 0, %v507_v51  ;;  %v696_v57 = vshrl.u32 %v695_v52, 23  ;;  %v505_v24 = vsel %vm384_vm1, %v504_v32, %v503_v21 }
  0xf4   : > { %v576_v49 = vsel %vm570_vm14, %v1404_v30, %v575_v46  ;;  %v629_v59 = vadd.s32 %v628_v53, %v619_v6  ;;  %vm632_vm10 = vc.u32 %v1443_v22, %v1455_v19  ;;  %v379_v60 = vsel %vm377_vm9, %v378_v26, %v369_v45 }
  0xf5   : > { %v376_v34 = vsel %vm374_vm5, %v361_v40, %v375_v36  ;;  %v508_v47 = vsel %vm1427_vm3, %v1168_v9, %v505_v24  ;;  %v950_v43 = vadd.s32 4294967169, %v696_v57  ;;  %vm370_vm11 = vweird.f32 %v1165_v8 }
  0xf6   : > { %v380_v48 = vsel %vm373_vm7, %v376_v34, %v379_v60  ;;  %v510_v63 = vmul.f32 %v508_v47, %v508_v47  ;;  %v633_v30 = vadd.s32 1, %v629_v59  ;;  %v526_v62 = vadd.s32 3, %v509_v17 }
  0xf7   : > { %v381_v61 = vsel %vm370_vm11, nan, %v380_v48  ;;  %v630_v10 = vmul.u32 %v1358_v38, %v576_v49  ;;  %v702_v54 = vadd.s32 1, %v950_v43  ;;  %v692_v58 = vand.u32 2147483647, %v1398_v7 }
  0xf8   : > { %847 = vst [vmem:[%s1476_s8] sm:$0xff] %v381_v61  ;;  %v511_v15 = vmul.f32 -0.001358992, %v510_v63  ;;  %v518_v1 = vmul.f32 -0.00019511016, %v510_v63  ;;  %v634_v8 = vsel %vm632_vm10, %v633_v30, %v629_v59  ;;  %v527_v12 = vand.u32 3, %v526_v62 }
  0xf9   : > { %v635_v20 = vadd.s32 %v634_v8, %v630_v10  ;;  %vm703_vm12 = vcmp.gt.s32.totalorder %v702_v54, 0  ;;  %v699_v0 = vand.u32 8388607, %v692_v58  ;;  %vm525_vm14 = vweird.f32 %v1168_v9 }
  0xfa   : > { %v512_v44 = vadd.f32 0.041655596, %v511_v15  ;;  %v519_v23 = vadd.f32 0.008332121, %v518_v1  ;;  %v704_v55 = vsel %vm703_vm12, %v702_v54, 0  ;;  %vm528_vm13 = vcmp.lt.s32.totalorder %v527_v12, 2 }
  0xfb   : > { %v636_v2 = vadd.s32 536870912, %v635_v20  ;;  %v706_v38 = vand.u32 31, %v704_v55  ;;  %v700_v42 = vor.u32 8388608, %v699_v0  ;;  %v1491_v18 = vshrl.u32 %v704_v55, 5 }
  0xfc   : > { %v513_v3 = vmul.f32 %v512_v44, %v510_v63  ;;  %v520_v4 = vmul.f32 %v519_v23, %v510_v63  ;;  %vm529_vm0 = vcmp.eq.s32.totalorder %v527_v12, 0  ;;  %vm532_vm1 = vcmp.eq.s32.totalorder %v527_v12, 2 }
  0xfd   : > { %v1485_v25 = vshrl.u32 %v636_v2, 30  ;;  %v1487_v11 = vsub.s32 32, %v706_v38  ;;  %v709_v26 = vshll.u32 %v1075_v33, %v706_v38  ;;  %v712_v32 = vshll.u32 %v1076_v35, %v706_v38 }
  0xfe   : > { %v514_v14 = vadd.f32 -0.4999988, %v513_v3  ;;  %v521_v5 = vadd.f32 -0.16666654, %v520_v4  ;;  %v715_v17 = vshll.u32 %v1077_v37, %v706_v38  ;;  %v718_v57 = vshll.u32 %v1078_v39, %v706_v38 }
  0xff   : > { %v638_v27 = vshll.u32 %v1485_v25, 30  ;;  %v710_v21 = vshrl.u32 %v1076_v35, %v1487_v11  ;;  %v713_v28 = vshrl.u32 %v1077_v37, %v1487_v11  ;;  %v719_v46 = vshrl.u32 %v1079_v41, %v1487_v11 }
 0x100   : > { %v515_v16 = vmul.f32 %v514_v14, %v510_v63  ;;  %v522_v40 = vmul.f32 %v521_v5, %v510_v63  ;;  %v716_v6 = vshrl.u32 %v1078_v39, %v1487_v11  ;;  %v722_v34 = vshrl.u32 %v1080_v50, %v1487_v11 }
 0x101   : > { %v639_v51 = vsub.s32 %v635_v20, %v638_v27  ;;  %v1505_v49 = vor.u32 %v710_v21, %v709_v26  ;;  %v1507_v59 = vor.u32 %v713_v28, %v712_v32  ;;  %v720_v43 = vor.u32 %v719_v46, %v718_v57 }
 0x102   : > { %v516_v29 = vadd.f32 1.0, %v515_v16  ;;  %v523_v45 = vadd.f32 1.0, %v522_v40  ;;  %v721_v37 = vshll.u32 %v1079_v41, %v706_v38  ;;  %v1514_v48 = vshll.u32 %v700_v42, 8 }
 0x103   : > { %vm640_vm15 = vcmp.lt.s32.totalorder %v639_v51, 0  ;;  %v641_v52 = vsub.s32 0, %v639_v51  ;;  %vm724_vm2 = vcmp.lt.s32.totalorder %v1491_v18, 1  ;;  %vm727_vm3 = vcmp.lt.s32.totalorder %v1491_v18, 4 }
 0x104   : > { %v524_v53 = vmul.f32 %v523_v45, %v508_v47  ;;  %v533_v36 = vxor.u32 2147483648, %v516_v29  ;;  %v1511_v47 = vor.u32 %v716_v6, %v715_v17  ;;  %v723_v50 = vor.u32 %v722_v34, %v721_v37 }
 0x105   : > { %v642_v24 = vsel %vm640_vm15, %v641_v52, %v639_v51  ;;  %v732_v62 = vsel %vm724_vm2, %v1505_v49, %v1507_v59  ;;  %vm726_vm5 = vcmp.lt.s32.totalorder %v1491_v18, 3  ;;  %v733_v10 = vsel %vm727_vm3, %v720_v43, 920167782 }
 0x106   : > { %v530_v60 = vxor.u32 2147483648, %v524_v53  ;;  %v643_v35 = vclz %v642_v24  ;;  %v534_v63 = vsel %vm532_vm1, %v533_v36, %v524_v53  ;;  %v631_v54 = vadd.s32 %v1455_v19, %v1443_v22 }
 0x107   : > { %vm725_vm6 = vcmp.lt.s32.totalorder %v1491_v18, 2  ;;  %v734_v1 = vsel %vm726_vm5, %v1511_v47, %v733_v10  ;;  %v736_v44 = vsel %vm724_vm2, %v1507_v59, %v1511_v47  ;;  %v737_v22 = vsel %vm727_vm3, %v723_v50, 1326507024 }
 0x108   : > { %v531_v39 = vsel %vm529_vm0, %v516_v29, %v530_v60  ;;  %v948_v30 = vadd.s32 4294967294, %v643_v35  ;;  %v735_v20 = vsel %vm725_vm6, %v732_v62, %v734_v1  ;;  %v741_v19 = vand.u32 65535, %v1514_v48 }
 0x109   : > { %v535_v61 = vsel %vm528_vm13, %v531_v39, %v534_v63  ;;  %v765_v23 = vand.u32 65535, %v735_v20  ;;  %v766_v55 = vshrl.u32 %v735_v20, 16  ;;  %v738_v4 = vsel %vm726_vm5, %v720_v43, %v737_v22 }
 0x10a   : > { %v536_v41 = vsel %vm525_vm14, nan, %v535_v61  ;;  %vm949_vm4 = vcmp.lt.s32.totalorder %v948_v30, 0  ;;  %v739_v12 = vsel %vm725_vm6, %v736_v44, %v738_v4  ;;  %v742_v0 = vshrl.u32 %v1514_v48, 16 }
 0x10b   : > { %848 = vst [vmem:[%s1476_s8 + $0x8] sm:$0xff] %v536_v41  ;;  %v646_v15 = vsel %vm949_vm4, 0, %v948_v30  ;;  %v768_v14 = vmul.u32 %v766_v55, %v741_v19  ;;  %v743_v16 = vand.u32 65535, %v739_v12  ;;  %v744_v40 = vshrl.u32 %v739_v12, 16 }
 0x10c   : > { %v647_v8 = vsub.s32 32, %v646_v15  ;;  %v651_v9 = vsub.s32 4294967266, %v646_v15  ;;  %v648_v2 = vshll.u32 %v639_v51, %v646_v15  ;;  %v767_v42 = vmul.u32 %v765_v23, %v741_v19 }
 0x10d   : > { %v769_v21 = vmul.u32 %v765_v23, %v742_v0  ;;  %v771_v28 = vshll.u32 %v768_v14, 16  ;;  %vm1551_vm7 = vcmp.le.f32.partialorder %v537_v13, 0.7853982  ;;  %vm539_vm8 = vcmp.lt.s32.totalorder %v1185_v31, 0 }
 0x10e   : > { %v649_v38 = vshrl.u32 %v631_v54, %v647_v8  ;;  %v652_v3 = vadd.s32 127, %v651_v9  ;;  %v746_v45 = vmul.u32 %v744_v40, %v741_v19  ;;  %v747_v46 = vmul.u32 %v743_v16, %v742_v0 }
 0x10f   : > { %v770_v52 = vmul.u32 %v766_v55, %v742_v0  ;;  %vm775_vm9 = vc.u32 %v767_v42, %v771_v28  ;;  %v745_v6 = vmul.u32 %v743_v16, %v741_v19  ;;  %v748_v17 = vmul.u32 %v744_v40, %v742_v0 }
 0x110   : > { %v650_v5 = vor.u32 %v649_v38, %v648_v2  ;;  %v653_v27 = vshll.u32 %v652_v3, 23  ;;  %v749_v53 = vshll.u32 %v746_v45, 16  ;;  %v776_v36 = vsel %vm775_vm9, 1, %v1081_v56 }
 0x111   : > { %v773_v57 = vshll.u32 %v769_v21, 16  ;;  %v777_v24 = vadd.s32 %v771_v28, %v767_v42  ;;  %v778_v13 = vadd.s32 %v776_v36, %v770_v52  ;;  %v751_v60 = vshll.u32 %v747_v46, 16 }
 0x112   : > { %v654_v29 = vor.u32 4788187, %v653_v27  ;;  %v657_v26 = vcvt.s32.f32 %v650_v5  ;;  %vm753_vm10 = vc.u32 %v745_v6, %v749_v53  ;;  %v755_v35 = vadd.s32 %v749_v53, %v745_v6 }
 0x113   : > { %v708_v43 = vshrl.u32 %v1075_v33, %v1487_v11  ;;  %v729_v37 = vsel %vm727_vm3, %v1511_v47, 2102212464  ;;  %v754_v39 = vsel %vm753_vm10, 1, %v1081_v56  ;;  %vm779_vm11 = vc.u32 %v777_v24, %v773_v57 }
 0x114   : > { %v655_v32 = vand.u32 2147483647, %v654_v29  ;;  %v756_v30 = vadd.s32 %v754_v39, %v748_v17  ;;  %vm757_vm12 = vc.u32 %v755_v35, %v751_v60  ;;  %v780_v61 = vsel %vm779_vm11, 1, %v1081_v56 }
 0x115   : > { %v728_v50 = vsel %vm724_vm2, %v708_v43, %v1505_v49  ;;  %v758_v62 = vsel %vm757_vm12, 1, %v1081_v56  ;;  %v772_v41 = vshrl.u32 %v768_v14, 16  ;;  %v782_v33 = vadd.s32 %v780_v61, %v778_v13 }
 0x116   : > { %v658_v34 = vmul.f32 %v657_v26, %v655_v32  ;;  %v730_v47 = vsel %vm726_vm5, %v1507_v59, %v729_v37  ;;  %v750_v10 = vshrl.u32 %v746_v45, 16  ;;  %v760_v54 = vadd.s32 %v758_v62, %v756_v30 }
 0x117   : > { %v661_v15 = vsub.s32 4, %v1485_v25  ;;  %v774_v49 = vshrl.u32 %v769_v21, 16  ;;  %v783_v8 = vadd.s32 %v782_v33, %v772_v41  ;;  %v752_v9 = vshrl.u32 %v747_v46, 16 }
 0x118   : > { %v659_v63 = vxor.u32 2147483648, %v658_v34  ;;  %v761_v20 = vadd.s32 %v760_v54, %v750_v10  ;;  %v731_v44 = vsel %vm725_vm6, %v728_v50, %v730_v47  ;;  %v781_v55 = vadd.s32 %v777_v24, %v773_v57 }
 0x119   : > { %v784_v22 = vadd.s32 %v783_v8, %v774_v49  ;;  %v662_v2 = vsel %vm539_vm8, %v661_v15, %v1485_v25  ;;  %v785_v12 = vmul.u32 %v1514_v48, %v731_v44  ;;  %vm680_vm2 = vweird.f32 %v1185_v31 }
 0x11a   : > { %v660_v11 = vsel %vm539_vm8, %v659_v63, %v658_v34  ;;  %v762_v59 = vadd.s32 %v761_v20, %v752_v9  ;;  %v664_v18 = vsel %vm1551_vm7, 0, %v662_v2  ;;  %vm694_vm4 = vcmp.lt.s32.totalorder %v1398_v7, 0 }
 0x11b   : > { %v663_v1 = vsel %vm1551_vm7, %v1185_v31, %v660_v11  ;;  %v788_v38 = vadd.s32 1, %v784_v22  ;;  %v681_v21 = vadd.s32 3, %v664_v18  ;;  %vm693_vm5 = vcmp.le.f32.partialorder %v692_v58, 0.7853982 }
 0x11c   : > { %v665_v56 = vmul.f32 %v663_v1, %v663_v1  ;;  %vm787_vm13 = vc.u32 %v762_v59, %v781_v55  ;;  %v786_v43 = vadd.s32 %v781_v55, %v762_v59  ;;  %vm835_vm9 = vweird.f32 %v1398_v7 }
 0x11d   : > { %v789_v0 = vsel %vm787_vm13, %v788_v38, %v784_v22  ;;  %v682_v52 = vand.u32 3, %v681_v21 }
 0x11e   : > { %v666_v19 = vmul.f32 -0.001358992, %v665_v56  ;;  %v673_v23 = vmul.f32 -0.00019511016, %v665_v56  ;;  %v790_v27 = vadd.s32 %v789_v0, %v785_v12 }
 0x11f   : > { %vm684_vm15 = vcmp.eq.s32.totalorder %v682_v52, 0  ;;  %vm687_vm0 = vcmp.eq.s32.totalorder %v682_v52, 2  ;;  %vm683_vm1 = vcmp.lt.s32.totalorder %v682_v52, 2 }
 0x120   : > { %v667_v3 = vadd.f32 0.041655596, %v666_v19  ;;  %v674_v4 = vadd.f32 0.008332121, %v673_v23  ;;  %v791_v42 = vadd.s32 536870912, %v790_v27 }
 0x122   : > { %v668_v14 = vmul.f32 %v667_v3, %v665_v56  ;;  %v675_v5 = vmul.f32 %v674_v4, %v665_v56  ;;  %v792_v25 = vshrl.u32 %v791_v42, 30 }
 0x124   : > { %v669_v16 = vadd.f32 -0.4999988, %v668_v14  ;;  %v676_v40 = vadd.f32 -0.16666654, %v675_v5  ;;  %v793_v46 = vshll.u32 %v792_v25, 30  ;;  %v816_v54 = vsub.s32 4, %v792_v25 }
 0x126   : > { %v670_v28 = vmul.f32 %v669_v16, %v665_v56  ;;  %v677_v29 = vmul.f32 %v676_v40, %v665_v56  ;;  %v794_v6 = vsub.s32 %v790_v27, %v793_v46  ;;  %v817_v56 = vsel %vm694_vm4, %v816_v54, %v792_v25 }
 0x127   : > { %v819_v44 = vsel %vm693_vm5, 0, %v817_v56 }
 0x128   : > { %v671_v45 = vadd.f32 1.0, %v670_v28  ;;  %v678_v26 = vadd.f32 1.0, %v677_v29  ;;  %vm795_vm14 = vcmp.lt.s32.totalorder %v794_v6, 0  ;;  %v796_v53 = vsub.s32 0, %v794_v6 }
 0x129   : > { %v836_v55 = vadd.s32 3, %v819_v44 }
 0x12a   : > { %v679_v48 = vmul.f32 %v678_v26, %v663_v1  ;;  %v688_v32 = vxor.u32 2147483648, %v671_v45  ;;  %v797_v57 = vsel %vm795_vm14, %v796_v53, %v794_v6 }
 0x12b   : > { %v798_v13 = vclz %v797_v57  ;;  %v837_v4 = vand.u32 3, %v836_v55 }
 0x12c   : > { %v685_v51 = vxor.u32 2147483648, %v679_v48  ;;  %v689_v17 = vsel %vm687_vm0, %v688_v32, %v679_v48 }
 0x12d   : > { %v951_v60 = vadd.s32 4294967294, %v798_v13  ;;  %vm839_vm6 = vcmp.eq.s32.totalorder %v837_v4, 0  ;;  %vm842_vm7 = vcmp.eq.s32.totalorder %v837_v4, 2  ;;  %vm838_vm8 = vcmp.lt.s32.totalorder %v837_v4, 2 }
 0x12e   : > { %v686_v36 = vsel %vm684_vm15, %v671_v45, %v685_v51 }
 0x12f   : > { %v690_v24 = vsel %vm683_vm1, %v686_v36, %v689_v17  ;;  %vm952_vm3 = vcmp.lt.s32.totalorder %v951_v60, 0 }
 0x130   : > { %v691_v34 = vsel %vm680_vm2, nan, %v690_v24  ;;  %v801_v35 = vsel %vm952_vm3, 0, %v951_v60 }
 0x131   : > { %849 = vst [vmem:[%s1476_s8 + $0x10] sm:$0xff] %v691_v34  ;;  %v802_v37 = vsub.s32 32, %v801_v35  ;;  %v806_v39 = vsub.s32 4294967266, %v801_v35  ;;  %v803_v63 = vshll.u32 %v794_v6, %v801_v35 }
 0x133   : > { %v804_v30 = vshrl.u32 %v786_v43, %v802_v37  ;;  %v807_v61 = vadd.s32 127, %v806_v39 }
 0x135   : > { %v805_v50 = vor.u32 %v804_v30, %v803_v63  ;;  %v808_v62 = vshll.u32 %v807_v61, 23 }
 0x137   : > { %v809_v41 = vor.u32 4788187, %v808_v62  ;;  %v812_v11 = vcvt.s32.f32 %v805_v50 }
 0x139   : > { %v810_v33 = vand.u32 2147483647, %v809_v41 }
 0x13b   : > { %v813_v47 = vmul.f32 %v812_v11, %v810_v33 }
 0x13d   : > { %v814_v31 = vxor.u32 2147483648, %v813_v47 }
 0x13f   : > { %v815_v10 = vsel %vm694_vm4, %v814_v31, %v813_v47 }
 0x140   : > { %v818_v15 = vsel %vm693_vm5, %v1398_v7, %v815_v10 }
 0x141   : > { %v820_v1 = vmul.f32 %v818_v15, %v818_v15 }
 0x143   : > { %v821_v49 = vmul.f32 -0.001358992, %v820_v1  ;;  %v828_v8 = vmul.f32 -0.00019511016, %v820_v1 }
 0x145   : > { %v822_v9 = vadd.f32 0.041655596, %v821_v49  ;;  %v829_v20 = vadd.f32 0.008332121, %v828_v8 }
 0x147   : > { %v823_v22 = vmul.f32 %v822_v9, %v820_v1  ;;  %v830_v19 = vmul.f32 %v829_v20, %v820_v1 }
 0x149   : > { %v824_v23 = vadd.f32 -0.4999988, %v823_v22  ;;  %v831_v59 = vadd.f32 -0.16666654, %v830_v19 }
 0x14b   : > { %v825_v58 = vmul.f32 %v824_v23, %v820_v1  ;;  %v832_v2 = vmul.f32 %v831_v59, %v820_v1 }
 0x14d   : > { %v826_v38 = vadd.f32 1.0, %v825_v58  ;;  %v833_v3 = vadd.f32 1.0, %v832_v2 }
 0x14f   : > { %v834_v12 = vmul.f32 %v833_v3, %v818_v15  ;;  %v843_v0 = vxor.u32 2147483648, %v826_v38 }
 0x151   : > { %v840_v18 = vxor.u32 2147483648, %v834_v12  ;;  %v844_v5 = vsel %vm842_vm7, %v843_v0, %v834_v12 }
 0x153   : > { %v841_v14 = vsel %vm839_vm6, %v826_v38, %v840_v18 }
 0x154   : > { %v845_v27 = vsel %vm838_vm8, %v841_v14, %v844_v5 }
 0x155   : > { %v846_v16 = vsel %vm835_vm9, nan, %v845_v27 }
 0x156   : > { %850 = vst [vmem:[%s1476_s8 + $0x18] sm:$0xff] %v846_v16 }
 0x157   : > { %1038 = shalt.err (!%p1035_p3)
}
 0x158   : > { %s1082_s4 = smov 128   ;;  %s1083_s5 = smov 8  }
 0x159   : > { %962 = dma.vmem_to_hbm [thread:$0]  (%p1142_p5), %s865_s19, 512, %s867_s20, %s852_s16, %s1082_s4, %s1082_s4, %s1083_s5  }
 0x15a PF: > { %p968_p4 = scmp.ge.s32.totalorder %s1073_s15, 2  ;;  %s881_s6 = sand.u32 1, %s1061_s12  }
 0x15b   : > { %s882_s7 = scalar_lea.sflag [#allocation3], %s881_s6 }
 0x15c   : > { %p965_p7 = pnand %p968_p4, %p1146_p6 }
 0x15e   : > { %p966_p8 = pneg %p965_p7 }
 0x160   : > { %1056 = dma.done.wait (%p966_p8), %s882_s7, 512  }
 0x161   : > { %1058 = vsyncadd (%p966_p8), %s882_s7, 4294966784  ;;  %p13_p9 = scmp.ge.s32.totalorder %s1129_s18, 6   ;;  %s1639_s12 = smov %s1065_s13 }
 0x162   : > { %s1640_s13 = smov %s1069_s14  ;;  %s1641_s14 = smov %s1140_s21 }
 0x163   : > { %s1642_s15 = smov %s1129_s18  ;;  %15 = sbr.rel (!%p13_p9) target bundleno = 3 (0x3), region = 67 }
 0x168   :  { %888 = vsyncpa [#allocation3], 1 }
 0x169   :  { %890 = vsyncpa [#allocation3 + $0x1], 1 }

</bundles_post_ra>
